<compile_context>
chip_gen: v6e
topology: v6e:2x2x1
jax: 0.10.0
libtpu: 0.0.40
codegen_flags: <defaults>
</compile_context>

<pallas_src>
import functools

import jax
import jax.numpy as jnp
from jax import lax
from jax.experimental import pallas as pl
from jax.experimental.pallas import tpu as pltpu


# ----------------------------- Pallas kernels ------------------------------


def _pregate_kernel(x_ref, wi_ref, b_ref, pg_ref):
    """pregates[d] = x @ Wi[d] + b[d] for both directions.

    x_ref  : (TM, nIn)     row tile of flattened (T*B, nIn) input
    wi_ref : (2, nIn, 4H)  input-to-gate weights, gate order [i, f, o, g]
    b_ref  : (2, 1, 4H)    combined bias (b_ih + b_hh)
    pg_ref : (2, TM, 4H)   output pregates
    """
    x = x_ref[...]
    pg_ref[0] = jnp.dot(x, wi_ref[0], preferred_element_type=jnp.float32) + b_ref[0]
    pg_ref[1] = jnp.dot(x, wi_ref[1], preferred_element_type=jnp.float32) + b_ref[1]


def _lstm_kernel(pg_ref, wh_ref, h_out, h_st, c_st, *, hidden, tc):
    """One chunk of Tc recurrent steps of one LSTM direction.

    Grid = (direction d, chunk c). The index maps feed the forward direction
    (d=0) chunks in increasing time order and the backward direction (d=1)
    chunks in decreasing time order; within a chunk the backward direction
    walks local indices in reverse.

    pg_ref : (Tc, B, 4H)  pregates (x @ Wi + b) for this direction & chunk
    wh_ref : (H, 4H)      hidden-to-gate weight for this direction
    h_out  : (Tc, B, H)   hidden-state output block
    h_st   : (B, H)       VMEM scratch hidden state (persists across chunks)
    c_st   : (B, H)       VMEM scratch cell state
    """
    d = pl.program_id(0)
    c_idx = pl.program_id(1)

    @pl.when(c_idx == 0)
    def _():
        h_st[...] = jnp.zeros_like(h_st)
        c_st[...] = jnp.zeros_like(c_st)

    wh = wh_ref[...]

    def body(s, carry):
        h, c = carry
        ls = s + d * (tc - 1 - 2 * s)          # s (forward) or tc-1-s (backward)
        gates = pg_ref[ls] + jnp.dot(h, wh, preferred_element_type=jnp.float32)
        # gate column order [i, f, o | g]: one sigmoid over a contiguous 3H
        # block, one tanh over the last H block.
        ifo = jax.nn.sigmoid(gates[:, :3 * hidden])
        g = jnp.tanh(gates[:, 3 * hidden:])
        i = ifo[:, :hidden]
        f = ifo[:, hidden:2 * hidden]
        o = ifo[:, 2 * hidden:]
        c_new = f * c + i * g
        h_new = o * jnp.tanh(c_new)
        h_out[ls] = h_new
        return h_new, c_new

    h_fin, c_fin = lax.fori_loop(0, tc, body, (h_st[...], c_st[...]),
                                 unroll=True)
    h_st[...] = h_fin
    c_st[...] = c_fin


def _linear_kernel(hf_ref, hb_ref, wf_ref, wb_ref, b_ref, o_ref):
    """out = hf @ W_f + hb @ W_b + b  (== concat(hf, hb) @ W_emb + b)."""
    o_ref[...] = (
        jnp.dot(hf_ref[...], wf_ref[...], preferred_element_type=jnp.float32)
        + jnp.dot(hb_ref[...], wb_ref[...], preferred_element_type=jnp.float32)
        + b_ref[...])


# ------------------------------ wrapper -------------------------------------


def _pick_time_chunk(T, max_chunk=16):
    """Largest divisor of T that is <= max_chunk (chunks tile T exactly)."""
    for c in range(min(T, max_chunk), 0, -1):
        if T % c == 0:
            return c
    return 1


def bidirectional_lstm(x, kp, *, time_chunk=None, row_tile=512):
    """x: (T, B, nIn) float32 -> (T, B, nOut) float32."""
    T, B, n_in = x.shape
    H = kp["wh"].shape[-1] // 4
    n_out = kp["w_emb_f"].shape[-1]
    rows = T * B

    # ------------- stage 1: pregates = x @ Wi + b (both directions) ----------
    tm = rows if rows <= row_tile else row_tile
    x2d = x.reshape(rows, n_in)
    pg = pl.pallas_call(
        _pregate_kernel,
        grid=(pl.cdiv(rows, tm),),
        in_specs=[
            pl.BlockSpec((tm, n_in), lambda r: (r, 0)),
            pl.BlockSpec((2, n_in, 4 * H), lambda r: (0, 0, 0)),
            pl.BlockSpec((2, 1, 4 * H), lambda r: (0, 0, 0)),
        ],
        out_specs=pl.BlockSpec((2, tm, 4 * H), lambda r: (0, r, 0)),
        out_shape=jax.ShapeDtypeStruct((2, rows, 4 * H), jnp.float32),
        compiler_params=pltpu.CompilerParams(
            dimension_semantics=("parallel",)),
    )(x2d, kp["wi"], kp["b"])
    pg = pg.reshape(2, T, B, 4 * H)

    # ------------- stage 2: serial recurrence (only h @ Wh per step) ---------
    tc = _pick_time_chunk(T) if time_chunk is None else time_chunk
    assert T % tc == 0, "time_chunk must divide T"
    nc = T // tc

    def _time_map(d, c):
        # forward direction: chunk c ; backward direction: chunk nc-1-c
        return (d, c + d * (nc - 1 - 2 * c), 0, 0)

    h = pl.pallas_call(
        functools.partial(_lstm_kernel, hidden=H, tc=tc),
        grid=(2, nc),
        in_specs=[
            pl.BlockSpec((None, tc, B, 4 * H), _time_map),
            pl.BlockSpec((None, H, 4 * H), lambda d, c: (d, 0, 0)),
        ],
        out_specs=pl.BlockSpec((None, tc, B, H), _time_map),
        out_shape=jax.ShapeDtypeStruct((2, T, B, H), jnp.float32),
        scratch_shapes=[pltpu.VMEM((B, H), jnp.float32),
                        pltpu.VMEM((B, H), jnp.float32)],
        compiler_params=pltpu.CompilerParams(
            dimension_semantics=("parallel", "arbitrary"),
            vmem_limit_bytes=32 * 1024 * 1024),
    )(pg, kp["wh"])

    # ------------- stage 3: embedding Linear with split weight ---------------
    # (no concat: out = h_fwd @ W_f + h_bwd @ W_b + b)
    h2 = h.reshape(2, rows, H)
    out = pl.pallas_call(
        _linear_kernel,
        grid=(pl.cdiv(rows, tm),),
        in_specs=[
            pl.BlockSpec((None, tm, H), lambda r: (0, r, 0)),
            pl.BlockSpec((None, tm, H), lambda r: (1, r, 0)),
            pl.BlockSpec((H, n_out), lambda r: (0, 0)),
            pl.BlockSpec((H, n_out), lambda r: (0, 0)),
            pl.BlockSpec((1, n_out), lambda r: (0, 0)),
        ],
        out_specs=pl.BlockSpec((tm, n_out), lambda r: (r, 0)),
        out_shape=jax.ShapeDtypeStruct((rows, n_out), jnp.float32),
        compiler_params=pltpu.CompilerParams(
            dimension_semantics=("parallel",)),
    )(h2, h2, kp["w_emb_f"], kp["w_emb_b"], kp["b_emb"])

    return out.reshape(T, B, n_out)


# --------------------------- parameters --------------------------------------


def init_torch_params(key, n_in, hidden, n_out):
    """PyTorch-layout parameters (gate order [i, f, g, o], weight_ih: (4H, nIn))."""
    k = 1.0 / jnp.sqrt(jnp.float32(hidden))
    keys = jax.random.split(key, 12)
    u = lambda kk, shape: jax.random.uniform(kk, shape, jnp.float32, -k, k)
    return {
        "w_ih_f": u(keys[0], (4 * hidden, n_in)),
        "w_hh_f": u(keys[1], (4 * hidden, hidden)),
        "b_ih_f": u(keys[2], (4 * hidden,)),
        "b_hh_f": u(keys[3], (4 * hidden,)),
        "w_ih_b": u(keys[4], (4 * hidden, n_in)),
        "w_hh_b": u(keys[5], (4 * hidden, hidden)),
        "b_ih_b": u(keys[6], (4 * hidden,)),
        "b_hh_b": u(keys[7], (4 * hidden,)),
        "w_emb": u(keys[8], (n_out, 2 * hidden)),   # nn.Linear(2H, nOut).weight
        "b_emb": u(keys[9], (n_out,)),
    }


def prepare_kernel_params(p, hidden):
    """Kernel layout: transposed weights, gate columns reordered to [i, f, o, g],
    directions stacked, biases combined, embedding weight split per direction."""
    H = hidden

    def reorder(w):      # torch gate rows [i, f, g, o] -> [i, f, o, g]
        return jnp.concatenate([w[:2 * H], w[3 * H:], w[2 * H:3 * H]], axis=0)

    def gate_t(w):       # (4H, X) -> (X, 4H) with reordered gate columns
        return reorder(w).T

    wi = jnp.stack([gate_t(p["w_ih_f"]), gate_t(p["w_ih_b"])])      # (2, nIn, 4H)
    wh = jnp.stack([gate_t(p["w_hh_f"]), gate_t(p["w_hh_b"])])      # (2, H, 4H)
    b = jnp.stack([reorder(p["b_ih_f"] + p["b_hh_f"])[None, :],
                   reorder(p["b_ih_b"] + p["b_hh_b"])[None, :]])    # (2, 1, 4H)
    w_emb_t = p["w_emb"].T                                          # (2H, nOut)
    return {
        "wi": wi, "wh": wh, "b": b,
        "w_emb_f": w_emb_t[:H], "w_emb_b": w_emb_t[H:],
        "b_emb": p["b_emb"][None, :],
    }


# ------------------------------ reference ------------------------------------


def ref_forward(x, p, hidden):
    T, B, _ = x.shape
    H = hidden

    def make_cell(wi, wh, b):
        def cell(carry, x_t):
            h, c = carry
            gates = x_t @ wi.T + h @ wh.T + b
            i, f, g, o = jnp.split(gates, 4, axis=-1)
            i = jax.nn.sigmoid(i)
            f = jax.nn.sigmoid(f)
            g = jnp.tanh(g)
            o = jax.nn.sigmoid(o)
            c = f * c + i * g
            h = o * jnp.tanh(c)
            return (h, c), h
        return cell

    init = (jnp.zeros((B, H), jnp.float32), jnp.zeros((B, H), jnp.float32))
    _, hf = lax.scan(make_cell(p["w_ih_f"], p["w_hh_f"], p["b_ih_f"] + p["b_hh_f"]),
                     init, x)
    _, hb = lax.scan(make_cell(p["w_ih_b"], p["w_hh_b"], p["b_ih_b"] + p["b_hh_b"]),
                     init, x, reverse=True)
    rec = jnp.concatenate([hf, hb], axis=-1)
    out = rec.reshape(T * B, 2 * H) @ p["w_emb"].T + p["b_emb"]
    return out.reshape(T, B, -1)


# -------------------------------- main ---------------------------------------


if __name__ == "__main__":
    T, B, n_in, hidden, n_out = 8, 2, 16, 32, 16

    key = jax.random.PRNGKey(0)
    k_x, k_p = jax.random.split(key)
    x = jax.random.normal(k_x, (T, B, n_in), jnp.float32)

    torch_params = init_torch_params(k_p, n_in, hidden, n_out)
    kparams = prepare_kernel_params(torch_params, hidden)

    out = bidirectional_lstm(x, kparams)
    out = jax.block_until_ready(out)

    ref = ref_forward(x, torch_params, hidden)
    assert out.shape == (T, B, n_out)
    assert jnp.allclose(out, ref, atol=1e-4, rtol=1e-4), "mismatch vs reference"

    print("KERNEL_OK")
</pallas_src>

<mosaic_0001>
module attributes {stable_mosaic.version = 11 : i64} {
  func.func @_pregate_kernel(%arg0: i32, %arg1: memref<16x16xf32, #tpu.memory_space<vmem>>, %arg2: memref<2x16x128xf32, #tpu.memory_space<vmem>>, %arg3: memref<2x1x128xf32, #tpu.memory_space<vmem>>, %arg4: memref<2x16x128xf32, #tpu.memory_space<vmem>>) attributes {dimension_semantics = [#tpu.dimension_semantics<parallel>], iteration_bounds = array<i64: 1>, scalar_prefetch = 0 : i64, scratch_operands = 0 : i64, tpu.core_type = #tpu.core_type<tc>, window_params = [{transform_indices = @transform_0, window_bounds = array<i64: 16, 16>}, {pipeline_mode = #tpu.pipeline_mode<synchronous>, transform_indices = @transform_1, window_bounds = array<i64: 2, 16, 128>}, {pipeline_mode = #tpu.pipeline_mode<synchronous>, transform_indices = @transform_2, window_bounds = array<i64: 2, 1, 128>}, {transform_indices = @transform_3, window_bounds = array<i64: 2, 16, 128>}]} {
    %c0 = arith.constant 0 : index
    %c0_0 = arith.constant 0 : index
    %0 = vector.load %arg1[%c0, %c0_0] : memref<16x16xf32, #tpu.memory_space<vmem>>, vector<16x16xf32>
    %c0_1 = arith.constant 0 : index
    %c0_2 = arith.constant 0 : index
    %c0_3 = arith.constant 0 : index
    %1 = vector.load %arg2[%c0_1, %c0_2, %c0_3] : memref<2x16x128xf32, #tpu.memory_space<vmem>>, vector<1x16x128xf32>
    %2 = vector.shape_cast %1 : vector<1x16x128xf32> to vector<16x128xf32>
    %cst = arith.constant dense<0.000000e+00> : vector<16x128xf32>
    %3 = tpu.matmul %0, %2, %cst {dimension_numbers = #tpu.dot_dimension_numbers<[1], [0], [0], [1], [0, 0, 1, 1], [], []>} : vector<16x16xf32>, vector<16x128xf32>, vector<16x128xf32> -> vector<16x128xf32>
    %c0_4 = arith.constant 0 : index
    %c0_5 = arith.constant 0 : index
    %c0_6 = arith.constant 0 : index
    %4 = vector.load %arg3[%c0_4, %c0_5, %c0_6] : memref<2x1x128xf32, #tpu.memory_space<vmem>>, vector<1x1x128xf32>
    %5 = vector.shape_cast %4 : vector<1x1x128xf32> to vector<1x128xf32>
    %6 = vector.broadcast %5 : vector<1x128xf32> to vector<16x128xf32>
    %7 = arith.addf %3, %6 : vector<16x128xf32>
    %c0_7 = arith.constant 0 : index
    %c0_8 = arith.constant 0 : index
    %c0_9 = arith.constant 0 : index
    %8 = vector.load %arg4[%c0_7, %c0_8, %c0_9] : memref<2x16x128xf32, #tpu.memory_space<vmem>>, vector<1x16x128xf32>
    %9 = vector.shape_cast %8 : vector<1x16x128xf32> to vector<16x128xf32>
    %10 = vector.shape_cast %7 : vector<16x128xf32> to vector<1x16x128xf32>
    tpu.vector_store %arg4[%c0_7, %c0_8, %c0_9], %10 {strides = array<i32>} : memref<2x16x128xf32, #tpu.memory_space<vmem>>, vector<1x16x128xf32>,
    %c1 = arith.constant 1 : index
    %c0_10 = arith.constant 0 : index
    %c0_11 = arith.constant 0 : index
    %11 = vector.load %arg2[%c1, %c0_10, %c0_11] : memref<2x16x128xf32, #tpu.memory_space<vmem>>, vector<1x16x128xf32>
    %12 = vector.shape_cast %11 : vector<1x16x128xf32> to vector<16x128xf32>
    %cst_12 = arith.constant dense<0.000000e+00> : vector<16x128xf32>
    %13 = tpu.matmul %0, %12, %cst_12 {dimension_numbers = #tpu.dot_dimension_numbers<[1], [0], [0], [1], [0, 0, 1, 1], [], []>} : vector<16x16xf32>, vector<16x128xf32>, vector<16x128xf32> -> vector<16x128xf32>
    %c1_13 = arith.constant 1 : index
    %c0_14 = arith.constant 0 : index
    %c0_15 = arith.constant 0 : index
    %14 = vector.load %arg3[%c1_13, %c0_14, %c0_15] : memref<2x1x128xf32, #tpu.memory_space<vmem>>, vector<1x1x128xf32>
    %15 = vector.shape_cast %14 : vector<1x1x128xf32> to vector<1x128xf32>
    %16 = vector.broadcast %15 : vector<1x128xf32> to vector<16x128xf32>
    %17 = arith.addf %13, %16 : vector<16x128xf32>
    %c1_16 = arith.constant 1 : index
    %c0_17 = arith.constant 0 : index
    %c0_18 = arith.constant 0 : index
    %18 = vector.load %arg4[%c1_16, %c0_17, %c0_18] : memref<2x16x128xf32, #tpu.memory_space<vmem>>, vector<1x16x128xf32>
    %19 = vector.shape_cast %18 : vector<1x16x128xf32> to vector<16x128xf32>
    %20 = vector.shape_cast %17 : vector<16x128xf32> to vector<1x16x128xf32>
    tpu.vector_store %arg4[%c1_16, %c0_17, %c0_18], %20 {strides = array<i32>} : memref<2x16x128xf32, #tpu.memory_space<vmem>>, vector<1x16x128xf32>,
    return
  }
  func.func @transform_0(%arg0: i32) -> (i32, i32) {
    %c0_i32 = arith.constant 0 : i32
    %c0_i32_0 = arith.constant 0 : i32
    return %arg0, %c0_i32 : i32, i32
  }
  func.func @transform_1(%arg0: i32) -> (i32, i32, i32) {
    %c0_i32 = arith.constant 0 : i32
    %c0_i32_0 = arith.constant 0 : i32
    %c0_i32_1 = arith.constant 0 : i32
    %c0_i32_2 = arith.constant 0 : i32
    return %c0_i32, %c0_i32_0, %c0_i32_1 : i32, i32, i32
  }
  func.func @transform_2(%arg0: i32) -> (i32, i32, i32) {
    %c0_i32 = arith.constant 0 : i32
    %c0_i32_0 = arith.constant 0 : i32
    %c0_i32_1 = arith.constant 0 : i32
    %c0_i32_2 = arith.constant 0 : i32
    return %c0_i32, %c0_i32_0, %c0_i32_1 : i32, i32, i32
  }
  func.func @transform_3(%arg0: i32) -> (i32, i32, i32) {
    %c0_i32 = arith.constant 0 : i32
    %c0_i32_0 = arith.constant 0 : i32
    %c0_i32_1 = arith.constant 0 : i32
    return %c0_i32, %arg0, %c0_i32_0 : i32, i32, i32
  }
}

</mosaic_0001>

<bundles_post_ra>
// kernel: tpu_custom_call.1
= control target key start
LH: loop header
LB: loop body
LE: loop exit
PB: predicated region body
PF: predicated region fallthrough
CT: control target
= control target key end

     0   :  { %8 = vsyncpa [#allocation3], 0  ;;  %s394_s0 = inlined_call_operand.hbm [shape: f32[16,16], index: 0, kind: input, shape index: {}]   ;;  %s395_s1 = inlined_call_operand.hbm [shape: f32[2,16,128], index: 1, kind: input, shape index: {}]   ;;  %s396_s2 = inlined_call_operand.vmem [shape: f32[2,1,128], index: 2, kind: input, shape index: {}]   ;;  %s397_s3 = inlined_call_operand.hbm [shape: f32[2,16,128], index: 3, kind: output, shape index: {}]  }
   0x1   :  { %9 = vsyncpa [#allocation6], 0 }
   0x2   :  { %10 = vsyncpa [#allocation4], 0  ;;  %s345_s12 = smov [#allocation2]  }
   0x3   :  { %s16_s13 = sshll.u32 %s345_s12, 4  ;;  %s17_s13 = int_to_ptr.vmem [resolvable:$true] %s16_s13 }
   0x4   :  { %s287_s14 = scalar_lea.vmem %s17_s13, 256  ;;  %p292_p1 = scmp.lt.s32.totalorder %s17_s13, %s17_s13 }
   0x5   :  { %p288_p0 = scmp.ne.s32.totalorder %s17_s13, %s287_s14  ;;  %p293_p2 = scmp.lt.s32.totalorder %s287_s14, %s287_s14 }
   0x7   :  { %p294_p3 = por %p293_p2, %p292_p1 }
   0x9   :  { %p295_p4 = pnand %p294_p3, %p288_p0 }
   0xb   :  { %298 = shalt.err (!%p295_p4)
}
   0xc   :  { %s346_s15 = smov 128   ;;  %s347_s16 = smov 8  }
   0xd   :  { %22 = dma.hbm_to_vmem [thread:$0]  %s394_s0, 256, %s17_s13, [#allocation3], %s346_s15, %s346_s15, %s347_s16  }
   0xe   :  { %s348_s19 = smov [#allocation5]  }
   0xf   :  { %s28_s20 = sshll.u32 %s348_s19, 4  ;;  %s29_s20 = int_to_ptr.vmem [resolvable:$true] %s28_s20 }
  0x10   :  { %s307_s21 = scalar_lea.vmem %s29_s20, 512  ;;  %p312_p6 = scmp.lt.s32.totalorder %s29_s20, %s29_s20 }
  0x11   :  { %p308_p5 = scmp.ne.s32.totalorder %s29_s20, %s307_s21  ;;  %p313_p7 = scmp.lt.s32.totalorder %s307_s21, %s307_s21 }
  0x13   :  { %p314_p8 = por %p313_p7, %p312_p6 }
  0x15   :  { %p315_p9 = pnand %p314_p8, %p308_p5 }
  0x17   :  { %318 = shalt.err (!%p315_p9)
}
  0x18   :  { %34 = dma.hbm_to_vmem [thread:$0]  %s395_s1, 512, %s29_s20, [#allocation6], %s346_s15, %s346_s15, %s347_s16  }
  0x19   :  { %339 = dma.done.wait [#allocation3], 256  }
  0x1a   :  { %340 = vsyncadd [#allocation3], 4294967040 }
  0x1b   :  { %341 = dma.done.wait [#allocation6], 512  }
  0x1c   :  { %342 = vsyncadd [#allocation6], 4294966784  ;;  %v46_v0 = vld [vmem:[#allocation5 + $0x8] sm:$0xff]  ;;  %v140_v1 = vld [vmem:[#allocation5 + $0x18] sm:$0xff]  ;;  %vm54_vm0 = vcmask 130048   ;;  %s349_s26 = smov [#allocation7]  }
  0x1d   :  { %v45_v2 = vld [vmem:[#allocation5] sm:$0xff]  ;;  %260 = vmatprep.subr.mxu0 %v46_v0  ;;  %267 = vmatprep.subr.mxu1 %v140_v1  ;;  %v139_v3 = vld [vmem:[#allocation5 + $0x10] sm:$0xff]  ;;  %v44_v5 = vld [vmem:[#allocation2 + $0x8] sm:$0xff]  ;;  %s232_s27 = sshll.u32 %s349_s26, 4  ;;  %s233_s27 = int_to_ptr.vmem [resolvable:$true] %s232_s27 }
  0x1e   :  { %v43_v4 = vld [vmem:[#allocation2] sm:$0xff]  ;;  %261 = vmatpush3.msra.mxu0 %v46_v0  ;;  %268 = vmatpush3.msra.mxu1 %v140_v1  ;;  %s319_s28 = scalar_lea.vmem %s233_s27, 512  ;;  %p324_p11 = scmp.lt.s32.totalorder %s233_s27, %s233_s27 }
  0x1f   :  { %262 = vmatprep.subr.mxu0 %v45_v2  ;;  %269 = vmatprep.subr.mxu1 %v139_v3  ;;  %v245_v6 = vld [vmem:[%s396_s2] ss:$0 sm:$0xff]  ;;  %v249_v7 = vld [vmem:[%s396_s2 + $0x1] ss:$0 sm:$0xff]  ;;  %p320_p10 = scmp.ne.s32.totalorder %s233_s27, %s319_s28  ;;  %p325_p12 = scmp.lt.s32.totalorder %s319_s28, %s319_s28 }
  0x20   :  { %263 = vmatpush3.msra.mxu0 %v45_v2  ;;  %264 = vmatprep.mubr.msk.f32.mxu0 %vm54_vm0, %v43_v4 }
  0x21   :  { %270 = vmatpush3.msra.mxu1 %v139_v3  ;;  %271 = vmatprep.mubr.msk.f32.mxu1 %vm54_vm0, %v43_v4  ;;  %p326_p13 = por %p325_p12, %p324_p11 }
  0x22   :  { %265 = vmatmul.mubr.msk.f32.vlgmr.msra.gmra.mxu0 %vm54_vm0, %v44_v5  ;;  %272 = vmatmul.mubr.msk.f32.vlgmr.msra.gmra.mxu1 %vm54_vm0, %v44_v5 }
  0x23   :  { %p327_p0 = pnand %p326_p13, %p320_p10 }
  0xe2   :  { %v266_v8 = vpop.f32.mrf.mxu0  ;;  %v273_v9 = vpop.f32.mrf.mxu1 }
  0xe3   :  { %v133_v10 = vadd.f32 %v266_v8, %v245_v6  ;;  %v221_v11 = vadd.f32 %v273_v9, %v249_v7 }
  0xe4   :  { %v127_v12 = vpop.f32.mrf.mxu0  ;;  %v215_v13 = vpop.f32.mrf.mxu1 }
  0xe5   :  { %137 = vst [vmem:[#allocation7 + $0x8] sm:$0xff] %v133_v10  ;;  %226 = vst [vmem:[#allocation7 + $0x18] sm:$0xff] %v221_v11  ;;  %v128_v14 = vadd.f32 %v245_v6, %v127_v12  ;;  %v216_v15 = vadd.f32 %v249_v7, %v215_v13 }
  0xe7   :  { %136 = vst [vmem:[#allocation7] sm:$0xff] %v128_v14  ;;  %225 = vst [vmem:[#allocation7 + $0x10] sm:$0xff] %v216_v15 }
  0xe8   :  { %330 = shalt.err (!%p327_p0)
}
  0xe9   :  { %238 = dma.vmem_to_hbm [thread:$0]  %s233_s27, 512, %s397_s3, [#allocation4], %s346_s15, %s346_s15, %s347_s16  }
  0xea   :  { %343 = dma.done.wait [#allocation4], 512  }
  0xeb   :  { %344 = vsyncadd [#allocation4], 4294966784 }
  0xec   :  { %242 = vsyncpa [#allocation3], 1 }
  0xed   :  { %243 = vsyncpa [#allocation6], 1 }
  0xee   :  { %244 = vsyncpa [#allocation4], 1 }

</bundles_post_ra>
